<compile_context>
chip_gen: v7x
topology: tpu7x:2x2x1
jax: 0.10.0
libtpu: 0.0.40
codegen_flags: <defaults>
</compile_context>

<pallas_src>
import functools

import jax
import jax.numpy as jnp
from jax.experimental import pallas as pl
from jax.experimental.pallas import tpu as pltpu


def block_kernel(x_ref, gamma_ref, beta_ref, wqkv_ref, wproj_ref, bproj_ref,
                 o_ref, *, num_heads, scale, eps):
    Bb, N, C = x_ref.shape
    H = num_heads
    hd = C // H
    dt = x_ref.dtype  # compute dtype for MXU operands (bf16 in -> bf16 MXU)

    x = x_ref[...].reshape(Bb * N, C)

    # ---- LayerNorm (biased variance, eps, affine): stats in f32 only ----
    xf = x.astype(jnp.float32)
    mean = jnp.mean(xf, axis=-1, keepdims=True)
    var = jnp.mean(jnp.square(xf - mean), axis=-1, keepdims=True)
    xn = (xf - mean) * jax.lax.rsqrt(var + eps)
    xn = xn * gamma_ref[0].astype(jnp.float32) + beta_ref[0].astype(jnp.float32)
    xn = xn.astype(dt)  # back to compute dtype before hitting the MXU

    # ---- QKV projection: one (Bb*N, C) x (C, 3C) dot, f32 accumulate ----
    qkv = jnp.dot(xn, wqkv_ref[...], preferred_element_type=jnp.float32)

    q = qkv[:, 0 * C:1 * C] * scale  # fold attention scale into q (cheap dim)
    k = qkv[:, 1 * C:2 * C]
    v = qkv[:, 2 * C:3 * C]

    def split_heads(t):  # (Bb*N, C) -> (Bb*H, N, hd)
        t = t.reshape(Bb, N, H, hd)
        t = jnp.swapaxes(t, 1, 2)
        return t.reshape(Bb * H, N, hd)

    qh = split_heads(q.astype(dt))
    kh = split_heads(k.astype(dt))
    vh = split_heads(v.astype(dt))

    # ---- Attention: single batched contraction over all (batch, head) ----
    s = jnp.einsum('gnd,gmd->gnm', qh, kh,
                   preferred_element_type=jnp.float32)          # (Bb*H, N, N)
    s = s - jnp.max(s, axis=-1, keepdims=True)
    p = jnp.exp(s)
    denom = jnp.sum(p, axis=-1, keepdims=True)                  # (Bb*H, N, 1)
    ctx = jnp.einsum('gnm,gmd->gnd', p.astype(dt), vh,
                     preferred_element_type=jnp.float32)        # (Bb*H, N, hd)
    # Softmax normalization is linear: apply it once to the (much smaller)
    # context.  Exact f32 reciprocal on the tiny (G, N, 1) denominator.
    ctx = ctx * (1.0 / denom)

    # merge heads: (Bb*H, N, hd) -> (Bb*N, C)
    ctx = ctx.reshape(Bb, H, N, hd)
    ctx = jnp.swapaxes(ctx, 1, 2).reshape(Bb * N, C)

    # ---- Output projection (with bias) ----
    out = jnp.dot(ctx.astype(dt), wproj_ref[...],
                  preferred_element_type=jnp.float32)
    out = out + bproj_ref[0].astype(jnp.float32)
    o_ref[...] = out.reshape(Bb, N, C).astype(o_ref.dtype)


def _pick_batch_block(B, N, C, H, budget_bytes=24 * 1024 * 1024):
    """Largest divisor of B whose f32 intermediates fit the VMEM budget, while
    keeping >= 2 grid steps when possible (feed both TensorCores on v7x)."""
    hd = C // H
    bytes_per_batch = 4 * (N * 3 * C          # qkv (f32 accumulate)
                           + 3 * H * N * hd   # q/k/v head-split copies
                           + 2 * H * N * N    # scores + probabilities
                           + 4 * N * C)       # x, xn, ctx, out
    max_bb = max(1, budget_bytes // max(bytes_per_batch, 1))
    if B > 1:
        max_bb = max(1, min(max_bb, B // 2))  # keep the grid >= 2 steps
    bb = 1
    for d in range(1, B + 1):
        if B % d == 0 and d <= max_bb:
            bb = d
    return bb


def block_forward(x, gamma, beta, w_qkv, w_proj, b_proj, *, num_heads,
                  eps=1e-5):
    B, N, C = x.shape
    assert C % num_heads == 0
    scale = (C // num_heads) ** -0.5
    Bb = _pick_batch_block(B, N, C, num_heads)

    kernel = functools.partial(block_kernel, num_heads=num_heads, scale=scale,
                               eps=eps)
    gamma2 = gamma.reshape(1, C)
    beta2 = beta.reshape(1, C)
    bproj2 = b_proj.reshape(1, C)

    return pl.pallas_call(
        kernel,
        out_shape=jax.ShapeDtypeStruct((B, N, C), x.dtype),
        grid_spec=pltpu.PrefetchScalarGridSpec(
            num_scalar_prefetch=0,
            grid=(B // Bb,),
            in_specs=[
                pl.BlockSpec((Bb, N, C), lambda b: (b, 0, 0)),    # x
                pl.BlockSpec((1, C), lambda b: (0, 0)),           # ln gamma
                pl.BlockSpec((1, C), lambda b: (0, 0)),           # ln beta
                pl.BlockSpec((C, 3 * C), lambda b: (0, 0)),       # qkv weight
                pl.BlockSpec((C, C), lambda b: (0, 0)),           # proj weight
                pl.BlockSpec((1, C), lambda b: (0, 0)),           # proj bias
            ],
            out_specs=pl.BlockSpec((Bb, N, C), lambda b: (b, 0, 0)),
        ),
        compiler_params=pltpu.CompilerParams(
            dimension_semantics=("parallel",),
            vmem_limit_bytes=48 * 1024 * 1024),
    )(x, gamma2, beta2, w_qkv, w_proj, bproj2)


def block_reference(x, gamma, beta, w_qkv, w_proj, b_proj, *, num_heads):
    """Pure-JAX reference mirroring the PyTorch Block.forward."""
    B, N, C = x.shape
    hd = C // num_heads
    scale = hd ** -0.5
    mean = jnp.mean(x, axis=-1, keepdims=True)
    var = jnp.mean((x - mean) ** 2, axis=-1, keepdims=True)
    xn = (x - mean) / jnp.sqrt(var + 1e-5) * gamma + beta
    qkv = xn @ w_qkv                                     # (B, N, 3C)
    qkv = qkv.reshape(B, N, 3, num_heads, hd).transpose(2, 0, 3, 1, 4)
    q, k, v = qkv[0], qkv[1], qkv[2]                     # (B, H, N, hd)
    attn = (q @ jnp.swapaxes(k, -2, -1)) * scale
    attn = jax.nn.softmax(attn, axis=-1)
    ctx = (attn @ v).transpose(0, 2, 1, 3).reshape(B, N, C)
    return ctx @ w_proj + b_proj


if __name__ == "__main__":
    B, N, C, H = 2, 8, 32, 4

    key = jax.random.PRNGKey(0)
    kx, kg, kb, kq, kp, kpb = jax.random.split(key, 6)
    x = jax.random.normal(kx, (B, N, C), dtype=jnp.float32)
    gamma = 1.0 + 0.1 * jax.random.normal(kg, (C,), dtype=jnp.float32)
    beta = 0.1 * jax.random.normal(kb, (C,), dtype=jnp.float32)
    w_qkv = jax.random.normal(kq, (C, 3 * C), dtype=jnp.float32) / jnp.sqrt(C)
    w_proj = jax.random.normal(kp, (C, C), dtype=jnp.float32) / jnp.sqrt(C)
    b_proj = 0.1 * jax.random.normal(kpb, (C,), dtype=jnp.float32)

    out = block_forward(x, gamma, beta, w_qkv, w_proj, b_proj, num_heads=H)
    out = jax.block_until_ready(out)

    ref = block_reference(x, gamma, beta, w_qkv, w_proj, b_proj, num_heads=H)
    assert out.shape == (B, N, C)
    assert jnp.allclose(out, ref, atol=2e-3, rtol=2e-3), "mismatch vs reference"

    print("KERNEL_OK")
</pallas_src>

<mosaic_0001>
module attributes {stable_mosaic.version = 11 : i64} {
  func.func @block_kernel(%arg0: i32, %arg1: memref<1x8x32xf32, #tpu.memory_space<vmem>>, %arg2: memref<1x32xf32, #tpu.memory_space<vmem>>, %arg3: memref<1x32xf32, #tpu.memory_space<vmem>>, %arg4: memref<32x96xf32, #tpu.memory_space<vmem>>, %arg5: memref<32x32xf32, #tpu.memory_space<vmem>>, %arg6: memref<1x32xf32, #tpu.memory_space<vmem>>, %arg7: memref<1x8x32xf32, #tpu.memory_space<vmem>>) attributes {dimension_semantics = [#tpu.dimension_semantics<parallel>], iteration_bounds = array<i64: 2>, scalar_prefetch = 0 : i64, scratch_operands = 0 : i64, tpu.core_type = #tpu.core_type<tc>, window_params = [{transform_indices = @transform_0, window_bounds = array<i64: 1, 8, 32>}, {pipeline_mode = #tpu.pipeline_mode<synchronous>, transform_indices = @transform_1, window_bounds = array<i64: 1, 32>}, {pipeline_mode = #tpu.pipeline_mode<synchronous>, transform_indices = @transform_2, window_bounds = array<i64: 1, 32>}, {pipeline_mode = #tpu.pipeline_mode<synchronous>, transform_indices = @transform_3, window_bounds = array<i64: 32, 96>}, {pipeline_mode = #tpu.pipeline_mode<synchronous>, transform_indices = @transform_4, window_bounds = array<i64: 32, 32>}, {pipeline_mode = #tpu.pipeline_mode<synchronous>, transform_indices = @transform_5, window_bounds = array<i64: 1, 32>}, {transform_indices = @transform_6, window_bounds = array<i64: 1, 8, 32>}]} {
    %c0 = arith.constant 0 : index
    %c0_0 = arith.constant 0 : index
    %c0_1 = arith.constant 0 : index
    %0 = vector.load %arg1[%c0, %c0_0, %c0_1] : memref<1x8x32xf32, #tpu.memory_space<vmem>>, vector<1x8x32xf32>
    %1 = vector.shape_cast %0 : vector<1x8x32xf32> to vector<8x32xf32>
    %cst = arith.constant dense<0.000000e+00> : vector<8xf32>
    %2 = vector.multi_reduction <add>, %1, %cst [1] : vector<8x32xf32> to vector<8xf32>
    %3 = vector.shape_cast %2 : vector<8xf32> to vector<8x1xf32>
    %cst_2 = arith.constant 3.200000e+01 : f32
    %4 = vector.broadcast %cst_2 : f32 to vector<8x1xf32>
    %5 = arith.divf %3, %4 : vector<8x1xf32>
    %6 = vector.broadcast %5 : vector<8x1xf32> to vector<8x32xf32>
    %7 = arith.subf %1, %6 : vector<8x32xf32>
    %8 = arith.mulf %7, %7 : vector<8x32xf32>
    %cst_3 = arith.constant dense<0.000000e+00> : vector<8xf32>
    %9 = vector.multi_reduction <add>, %8, %cst_3 [1] : vector<8x32xf32> to vector<8xf32>
    %10 = vector.shape_cast %9 : vector<8xf32> to vector<8x1xf32>
    %cst_4 = arith.constant 3.200000e+01 : f32
    %11 = vector.broadcast %cst_4 : f32 to vector<8x1xf32>
    %12 = arith.divf %10, %11 : vector<8x1xf32>
    %13 = vector.broadcast %5 : vector<8x1xf32> to vector<8x32xf32>
    %14 = arith.subf %1, %13 : vector<8x32xf32>
    %cst_5 = arith.constant 9.99999974E-6 : f32
    %15 = vector.broadcast %cst_5 : f32 to vector<8x1xf32>
    %16 = arith.addf %12, %15 : vector<8x1xf32>
    %17 = math.rsqrt %16 : vector<8x1xf32>
    %18 = vector.broadcast %17 : vector<8x1xf32> to vector<8x32xf32>
    %19 = arith.mulf %14, %18 : vector<8x32xf32>
    %c0_6 = arith.constant 0 : index
    %c0_7 = arith.constant 0 : index
    %20 = vector.load %arg2[%c0_6, %c0_7] : memref<1x32xf32, #tpu.memory_space<vmem>>, vector<1x32xf32>
    %21 = vector.shape_cast %20 : vector<1x32xf32> to vector<32xf32>
    %22 = vector.shape_cast %21 : vector<32xf32> to vector<1x32xf32>
    %23 = vector.broadcast %22 : vector<1x32xf32> to vector<8x32xf32>
    %24 = arith.mulf %19, %23 : vector<8x32xf32>
    %c0_8 = arith.constant 0 : index
    %c0_9 = arith.constant 0 : index
    %25 = vector.load %arg3[%c0_8, %c0_9] : memref<1x32xf32, #tpu.memory_space<vmem>>, vector<1x32xf32>
    %26 = vector.shape_cast %25 : vector<1x32xf32> to vector<32xf32>
    %27 = vector.shape_cast %26 : vector<32xf32> to vector<1x32xf32>
    %28 = vector.broadcast %27 : vector<1x32xf32> to vector<8x32xf32>
    %29 = arith.addf %24, %28 : vector<8x32xf32>
    %c0_10 = arith.constant 0 : index
    %c0_11 = arith.constant 0 : index
    %30 = vector.load %arg4[%c0_10, %c0_11] : memref<32x96xf32, #tpu.memory_space<vmem>>, vector<32x96xf32>
    %cst_12 = arith.constant dense<0.000000e+00> : vector<8x96xf32>
    %31 = tpu.matmul %29, %30, %cst_12 {dimension_numbers = #tpu.dot_dimension_numbers<[1], [0], [0], [1], [0, 0, 1, 1], [], []>} : vector<8x32xf32>, vector<32x96xf32>, vector<8x96xf32> -> vector<8x96xf32>
    %32 = vector.extract_strided_slice %31 {offsets = [0, 0], sizes = [8, 32], strides = [1, 1]} : vector<8x96xf32> to vector<8x32xf32>
    %cst_13 = arith.constant 0.353553385 : f32
    %33 = vector.broadcast %cst_13 : f32 to vector<8x32xf32>
    %34 = arith.mulf %32, %33 : vector<8x32xf32>
    %35 = vector.extract_strided_slice %31 {offsets = [0, 32], sizes = [8, 32], strides = [1, 1]} : vector<8x96xf32> to vector<8x32xf32>
    %36 = vector.extract_strided_slice %31 {offsets = [0, 64], sizes = [8, 32], strides = [1, 1]} : vector<8x96xf32> to vector<8x32xf32>
    %37 = vector.shape_cast %34 : vector<8x32xf32> to vector<1x8x4x8xf32>
    %38 = tpu.transpose %37, [0, 2, 1, 3] : vector<1x8x4x8xf32> -> vector<1x4x8x8xf32>
    %39 = vector.shape_cast %38 : vector<1x4x8x8xf32> to vector<4x8x8xf32>
    %40 = vector.shape_cast %35 : vector<8x32xf32> to vector<1x8x4x8xf32>
    %41 = tpu.transpose %40, [0, 2, 1, 3] : vector<1x8x4x8xf32> -> vector<1x4x8x8xf32>
    %42 = vector.shape_cast %41 : vector<1x4x8x8xf32> to vector<4x8x8xf32>
    %43 = vector.shape_cast %36 : vector<8x32xf32> to vector<1x8x4x8xf32>
    %44 = tpu.transpose %43, [0, 2, 1, 3] : vector<1x8x4x8xf32> -> vector<1x4x8x8xf32>
    %45 = vector.shape_cast %44 : vector<1x4x8x8xf32> to vector<4x8x8xf32>
    "tpu.trace_start"() <{level = 10 : i32, message = "gnd,gmd->gnm"}> : () -> ()
    %cst_14 = arith.constant dense<0.000000e+00> : vector<4x8x8xf32>
    %46 = tpu.matmul %39, %42, %cst_14 {dimension_numbers = #tpu.dot_dimension_numbers<[2], [2], [1], [1], [0, 0, 0, 1, 1, 1], [0], [0]>} : vector<4x8x8xf32>, vector<4x8x8xf32>, vector<4x8x8xf32> -> vector<4x8x8xf32>
    "tpu.trace_stop"() : () -> ()
    %cst_15 = arith.constant dense<0xFF800000> : vector<4x8xf32>
    %47 = vector.multi_reduction <maximumf>, %46, %cst_15 [2] : vector<4x8x8xf32> to vector<4x8xf32>
    %48 = vector.shape_cast %47 : vector<4x8xf32> to vector<4x8x1xf32>
    %49 = vector.broadcast %48 : vector<4x8x1xf32> to vector<4x8x8xf32>
    %50 = arith.subf %46, %49 : vector<4x8x8xf32>
    %51 = math.exp %50 : vector<4x8x8xf32>
    %cst_16 = arith.constant dense<0.000000e+00> : vector<4x8xf32>
    %52 = vector.multi_reduction <add>, %51, %cst_16 [2] : vector<4x8x8xf32> to vector<4x8xf32>
    %53 = vector.shape_cast %52 : vector<4x8xf32> to vector<4x8x1xf32>
    "tpu.trace_start"() <{level = 10 : i32, message = "gnm,gmd->gnd"}> : () -> ()
    %cst_17 = arith.constant dense<0.000000e+00> : vector<4x8x8xf32>
    %54 = tpu.matmul %51, %45, %cst_17 {dimension_numbers = #tpu.dot_dimension_numbers<[2], [1], [1], [2], [0, 0, 0, 1, 1, 2], [0], [0]>} : vector<4x8x8xf32>, vector<4x8x8xf32>, vector<4x8x8xf32> -> vector<4x8x8xf32>
    "tpu.trace_stop"() : () -> ()
    %cst_18 = arith.constant 1.000000e+00 : f32
    %55 = vector.broadcast %cst_18 : f32 to vector<4x8x1xf32>
    %56 = arith.divf %55, %53 : vector<4x8x1xf32>
    %57 = vector.broadcast %56 : vector<4x8x1xf32> to vector<4x8x8xf32>
    %58 = arith.mulf %54, %57 : vector<4x8x8xf32>
    %59 = vector.shape_cast %58 : vector<4x8x8xf32> to vector<1x4x8x8xf32>
    %60 = tpu.transpose %59, [0, 2, 1, 3] : vector<1x4x8x8xf32> -> vector<1x8x4x8xf32>
    %61 = vector.shape_cast %60 : vector<1x8x4x8xf32> to vector<8x32xf32>
    %c0_19 = arith.constant 0 : index
    %c0_20 = arith.constant 0 : index
    %62 = vector.load %arg5[%c0_19, %c0_20] : memref<32x32xf32, #tpu.memory_space<vmem>>, vector<32x32xf32>
    %cst_21 = arith.constant dense<0.000000e+00> : vector<8x32xf32>
    %63 = tpu.matmul %61, %62, %cst_21 {dimension_numbers = #tpu.dot_dimension_numbers<[1], [0], [0], [1], [0, 0, 1, 1], [], []>} : vector<8x32xf32>, vector<32x32xf32>, vector<8x32xf32> -> vector<8x32xf32>
    %c0_22 = arith.constant 0 : index
    %c0_23 = arith.constant 0 : index
    %64 = vector.load %arg6[%c0_22, %c0_23] : memref<1x32xf32, #tpu.memory_space<vmem>>, vector<1x32xf32>
    %65 = vector.shape_cast %64 : vector<1x32xf32> to vector<32xf32>
    %66 = vector.shape_cast %65 : vector<32xf32> to vector<1x32xf32>
    %67 = vector.broadcast %66 : vector<1x32xf32> to vector<8x32xf32>
    %68 = arith.addf %63, %67 : vector<8x32xf32>
    %69 = vector.shape_cast %68 : vector<8x32xf32> to vector<1x8x32xf32>
    %c0_24 = arith.constant 0 : index
    %c0_25 = arith.constant 0 : index
    %c0_26 = arith.constant 0 : index
    %70 = vector.load %arg7[%c0_24, %c0_25, %c0_26] : memref<1x8x32xf32, #tpu.memory_space<vmem>>, vector<1x8x32xf32>
    tpu.vector_store %arg7[%c0_24, %c0_25, %c0_26], %69 {strides = array<i32>} : memref<1x8x32xf32, #tpu.memory_space<vmem>>, vector<1x8x32xf32>,
    return
  }
  func.func @transform_0(%arg0: i32) -> (i32, i32, i32) {
    %c0_i32 = arith.constant 0 : i32
    %c0_i32_0 = arith.constant 0 : i32
    %c0_i32_1 = arith.constant 0 : i32
    return %arg0, %c0_i32, %c0_i32_0 : i32, i32, i32
  }
  func.func @transform_1(%arg0: i32) -> (i32, i32) {
    %c0_i32 = arith.constant 0 : i32
    %c0_i32_0 = arith.constant 0 : i32
    %c0_i32_1 = arith.constant 0 : i32
    return %c0_i32, %c0_i32_0 : i32, i32
  }
  func.func @transform_2(%arg0: i32) -> (i32, i32) {
    %c0_i32 = arith.constant 0 : i32
    %c0_i32_0 = arith.constant 0 : i32
    %c0_i32_1 = arith.constant 0 : i32
    return %c0_i32, %c0_i32_0 : i32, i32
  }
  func.func @transform_3(%arg0: i32) -> (i32, i32) {
    %c0_i32 = arith.constant 0 : i32
    %c0_i32_0 = arith.constant 0 : i32
    %c0_i32_1 = arith.constant 0 : i32
    return %c0_i32, %c0_i32_0 : i32, i32
  }
  func.func @transform_4(%arg0: i32) -> (i32, i32) {
    %c0_i32 = arith.constant 0 : i32
    %c0_i32_0 = arith.constant 0 : i32
    %c0_i32_1 = arith.constant 0 : i32
    return %c0_i32, %c0_i32_0 : i32, i32
  }
  func.func @transform_5(%arg0: i32) -> (i32, i32) {
    %c0_i32 = arith.constant 0 : i32
    %c0_i32_0 = arith.constant 0 : i32
    %c0_i32_1 = arith.constant 0 : i32
    return %c0_i32, %c0_i32_0 : i32, i32
  }
  func.func @transform_6(%arg0: i32) -> (i32, i32, i32) {
    %c0_i32 = arith.constant 0 : i32
    %c0_i32_0 = arith.constant 0 : i32
    %c0_i32_1 = arith.constant 0 : i32
    return %arg0, %c0_i32, %c0_i32_0 : i32, i32, i32
  }
}

</mosaic_0001>

<bundles_post_ra>
// kernel: tpu_custom_call.1
= control target key start
LH: loop header
LB: loop body
LE: loop exit
PB: predicated region body
PF: predicated region fallthrough
CT: control target
= control target key end

     0   :  { %11 = vsyncpa [#allocation3], 0  ;;  %s2674_s0 = inlined_call_operand.hbm [shape: f32[2,8,32], index: 0, kind: input, shape index: {}]   ;;  %s2675_s1 = inlined_call_operand.vmem [shape: f32[1,32], index: 1, kind: input, shape index: {}]   ;;  %s2676_s2 = inlined_call_operand.vmem [shape: f32[1,32], index: 2, kind: input, shape index: {}]   ;;  %s2677_s3 = inlined_call_operand.hbm [shape: f32[32,96], index: 3, kind: input, shape index: {}]   ;;  %s2678_s4 = inlined_call_operand.hbm [shape: f32[32,32], index: 4, kind: input, shape index: {}]   ;;  %s2679_s5 = inlined_call_operand.vmem [shape: f32[1,32], index: 5, kind: input, shape index: {}]   ;;  %s2680_s6 = inlined_call_operand.hbm [shape: f32[2,8,32], index: 6, kind: output, shape index: {}]  }
   0x1   :  { %13 = vsyncpa [#allocation3 + $0x1], 0 }
   0x2   :  { %14 = vsyncpa [#allocation6], 0 }
   0x3   :  { %15 = vsyncpa [#allocation4], 0 }
   0x4   :  { %17 = vsyncpa [#allocation4 + $0x1], 0  ;;  %s2294_s21 = smov 0   ;;  %s2296_s22 = smov 0  }
   0x5   :  { %s2298_s23 = smov 0   ;;  %s2300_s24 = smov 0  }
   0x6 LB: > { %s2315_s25 = sadd.s32 4294967295, %s2238_s24   ;;  %s1841_s26 = sadd.s32 4294967294, %s2238_s24   ;;  %s2238_s24 = sphi %s2300_s24, %s2700_s24   ;;  %s2234_s23 = sphi %s2298_s23, %s2699_s23   ;;  %s2230_s22 = sphi %s2296_s22, %s2698_s22   ;;  %s2226_s21 = sphi %s2294_s21, %s2697_s21  }
   0x7   : > { %p43_p0 = scmp.ne.s32.totalorder %s2230_s22, %s2226_s21  ;;  %p2681_p1 = scmp.eq.s32.totalorder %s2315_s25, 0 }
   0x8   : > { %p178_p3 = scmp.eq.s32.totalorder %s1841_s26, 1  ;;  %p1842_p5 = scmp.ge.s32.totalorder %s2238_s24, 1 }
   0x9   : > { %p2324_p4 = por %p2681_p1, %p43_p0  ;;  %p185_p7 = scmp.lt.s32.totalorder %s2238_s24, 3 }
   0xa   : > { %p2329_p6 = por %p178_p3, %p43_p0  ;;  %s2240_s30 = smov [#allocation5]  }
   0xb   : > { %s2684_s27 = scalar_select %p2324_p4, 1, 0 }
   0xc   : > { %s2685_s28 = scalar_select %p2329_p6, 1, 0 }
   0xd   : > { %p2334_p8 = pnand %p1842_p5, %p185_p7  ;;  %s203_s7 = sshll.u32 %s2240_s30, 4  ;;  %s2338_s7 = int_to_ptr.vmem [resolvable:$true] %s203_s7 }
   0xe   : > { %s2241_s9 = smov [#allocation7]   ;;  %s2082_s13 = scalar_lea.hbm %s2677_s3, 512 }
   0xf   : > { %p1994_p9 = pneg %p2334_p8  ;;  %s216_s10 = sshll.u32 %s2241_s9, 4  ;;  %s2349_s10 = int_to_ptr.vmem [resolvable:$true] %s216_s10 }
  0x10   : > { %p2083_p12 = scmp.ne.s32.totalorder %s2677_s3, %s2082_s13  ;;  %p2089_p5 = scmp.lt.u32.totalorder %s2082_s13, %s2677_s3 }
  0x11   : > { %p2345_p11 = pnand %p1994_p9, %p2681_p1 }
  0x13   : > { %p2084_p13 = pneg %p2345_p11 }
  0x15   : > { %p2085_p0 = pnand %p2084_p13, %p2083_p12 }
  0x17   : > { %p2086_p3 = pneg %p2085_p0 }
  0x19   : > { %p2091_p7 = pnand %p2089_p5, %p2086_p3 }
  0x1b   : > { %2094 = shalt.err (!%p2091_p7)
}
  0x1c   : > { %s2095_s18 = scalar_lea.vmem %s2338_s7, 512  ;;  %p2103_p2 = scmp.lt.s32.totalorder %s2338_s7, %s2338_s7 }
  0x1d   : > { %p2096_p9 = scmp.ne.s32.totalorder %s2338_s7, %s2095_s18  ;;  %p2104_p12 = scmp.lt.s32.totalorder %s2095_s18, %s2095_s18 }
  0x1f   : > { %p2098_p10 = pnand %p2096_p9, %p2084_p13  ;;  %p2105_p0 = por %p2104_p12, %p2103_p2 }
  0x21   : > { %p2099_p1 = pneg %p2098_p10 }
  0x23   : > { %p2106_p6 = pnand %p2105_p0, %p2099_p1 }
  0x25   : > { %2109 = shalt.err (!%p2106_p6)
}
  0x26   : > { %s2242_s19 = smov 128   ;;  %s2243_s20 = smov 8  }
  0x27   : > { %1997 = dma.hbm_to_vmem [thread:$0]  (!%p2345_p11), %s2677_s3, 512, %s2338_s7, [#allocation6], %s2242_s19, %s2242_s19, %s2243_s20  }
  0x28   : > { %s2110_s12 = scalar_lea.hbm %s2678_s4, 512 }
  0x29   : > { %p2111_p2 = scmp.ne.s32.totalorder %s2678_s4, %s2110_s12  ;;  %p2117_p10 = scmp.lt.u32.totalorder %s2110_s12, %s2678_s4 }
  0x2b   : > { %p2113_p1 = pnand %p2111_p2, %p2084_p13 }
  0x2d   : > { %p2114_p6 = pneg %p2113_p1 }
  0x2f   : > { %p2119_p3 = pnand %p2117_p10, %p2114_p6 }
  0x31   : > { %2122 = shalt.err (!%p2119_p3)
}
  0x32   : > { %s2123_s7 = scalar_lea.vmem %s2349_s10, 512  ;;  %p2131_p12 = scmp.lt.s32.totalorder %s2349_s10, %s2349_s10 }
  0x33   : > { %p2124_p5 = scmp.ne.s32.totalorder %s2349_s10, %s2123_s7  ;;  %p2132_p0 = scmp.lt.s32.totalorder %s2123_s7, %s2123_s7 }
  0x35   : > { %p2126_p7 = pnand %p2124_p5, %p2084_p13  ;;  %p2133_p2 = por %p2132_p0, %p2131_p12 }
  0x37   : > { %p2127_p9 = pneg %p2126_p7 }
  0x39   : > { %p2134_p1 = pnand %p2133_p2, %p2127_p9 }
  0x3b   : > { %2137 = shalt.err (!%p2134_p1)
}
  0x3c   : > { %2000 = dma.hbm_to_vmem [thread:$0]  (!%p2345_p11), %s2678_s4, 512, %s2349_s10, [#allocation6], %s2242_s19, %s2242_s19, %s2243_s20  }
  0x3d   : > { %s2404_s26 = sadd.s32 1, %s2238_s24   ;;  %s30_s8 = sadd.s32 1, %s2234_s23 }
  0x3e   : > { %s27_s30 = ssub.s32 %s2238_s24, %s2404_s26  ;;  %p37_p13 = scmp.ne.s32.totalorder %s2234_s23, %s2230_s22 }
  0x3f   : > { %p28_p6 = scmp.eq.s32.totalorder %s27_s30, 0  ;;  %p38_p10 = scmp.eq.s32.totalorder %s2238_s24, 0 }
  0x40   : > { %p2688_p3 = scmp.eq.s32.totalorder %s2315_s25, 1  ;;  %p2011_p7 = scmp.lt.s32.totalorder %s2238_s24, 2 }
  0x41   : > { %s2420_s11 = scalar_select %p28_p6, %s2234_s23, %s30_s8  }
  0x42   : > { %p2414_p5 = por %p2688_p3, %p37_p13  ;;  %p39_p9 = por %p38_p10, %p37_p13 }
  0x43   : > { %s233_s12 = sand.u32 1, %s2234_s23   ;;  %s1847_s10 = sshll.u32 %s2238_s24, 7 }
  0x44   : > { %s2689_s9 = scalar_select %p2414_p5, 1, 0 }
  0x45   : > { %s1846_s13 = sshll.u32 %s233_s12, 3  ;;  %s2427_s14 = scalar_lea.hbm %s2674_s0, %s1847_s10 }
  0x46   : > { %s237_s15 = scalar_lea.vmem [#allocation2], %s1846_s13  ;;  %p2431_p11 = pnand %p2011_p7, %p39_p9 }
  0x47   : > { %s244_s16 = sshll.u32 %s237_s15, 4  ;;  %s234_s17 = scalar_lea.sflag [#allocation3], %s233_s12  ;;  %s2429_s16 = int_to_ptr.vmem [resolvable:$true] %s244_s16 }
  0x48   : > { %s2138_s18 = scalar_lea.hbm %s2427_s14, 128  ;;  %p2140_p0 = pneg %p2431_p11 }
  0x49   : > { %p2139_p12 = scmp.ne.s32.totalorder %s2427_s14, %s2138_s18  ;;  %s2143_s13 = scalar_lea.hbm %s2674_s0, 256 }
  0x4a   : > { %p2144_p13 = scmp.lt.u32.totalorder %s2427_s14, %s2674_s0  ;;  %p2145_p6 = scmp.lt.u32.totalorder %s2143_s13, %s2138_s18 }
  0x4b   : > { %p2141_p2 = pnand %p2140_p0, %p2139_p12  ;;  %p2147_p3 = scmp.lt.u32.totalorder %s2138_s18, %s2427_s14 }
  0x4c   : > { %p2146_p10 = por %p2145_p6, %p2144_p13 }
  0x4d   : > { %p2142_p1 = pneg %p2141_p2 }
  0x4e   : > { %p2148_p7 = por %p2147_p3, %p2146_p10 }
  0x50   : > { %p2149_p9 = pnand %p2148_p7, %p2142_p1 }
  0x52   : > { %2152 = shalt.err (!%p2149_p9)
}
  0x53   : > { %s2153_s12 = scalar_lea.vmem %s2429_s16, 128  ;;  %s2244_s20 = smov [#allocation2]  }
  0x54   : > { %p2154_p12 = scmp.ne.s32.totalorder %s2429_s16, %s2153_s12  ;;  %s2158_s15 = sshll.u32 %s2244_s20, 4  ;;  %s2159_s15 = int_to_ptr.vmem [resolvable:$false] %s2158_s15 }
  0x55   : > { %s2160_s8 = scalar_lea.vmem %s2159_s15, 256  ;;  %p2161_p4 = scmp.lt.s32.totalorder %s2429_s16, %s2159_s15 }
  0x56   : > { %p2156_p2 = pnand %p2154_p12, %p2140_p0  ;;  %p2162_p13 = scmp.lt.s32.totalorder %s2160_s8, %s2153_s12 }
  0x58   : > { %p2157_p5 = pneg %p2156_p2  ;;  %p2163_p6 = por %p2162_p13, %p2161_p4 }
  0x5a   : > { %p2164_p10 = pnand %p2163_p6, %p2157_p5 }
  0x5c   : > { %2167 = shalt.err (!%p2164_p10)
}
  0x5d   : > { %2004 = dma.hbm_to_vmem [thread:$0]  (!%p2431_p11), %s2427_s14, 128, %s2429_s16, %s234_s17  }
  0x5e   : > { %253 = sbr.rel (%p2334_p8) target bundleno = 1866 (0x74a), region = 44  ;;  %s2463_s18 = sand.u32 (!%p2334_p8), 1, %s2230_s22  }
  0x5f   : > { %s1849_s30 = sshll.u32 (!%p2334_p8), %s2463_s18, 3  ;;  %s256_s13 = scalar_lea.sflag (!%p2334_p8), [#allocation3], %s2463_s18 }
  0x60   : > { %s259_s10 = scalar_lea.vmem (!%p2334_p8), [#allocation2], %s1849_s30  ;;  %p2691_p4 = scmp.ne.s32.totalorder (!%p2334_p8), %s2684_s27, 0 }
  0x65   : > { %2213 = dma.done.wait (%p2691_p4), %s256_s13, 128  }
  0x66   : > { %2215 = vsyncadd (%p2691_p4), %s256_s13, 4294967168  ;;  %p2692_p5 = scmp.eq.s32.totalorder %s2315_s25, 0 }
  0x68   : > { %2217 = dma.done.wait (%p2692_p5), [#allocation6], 1024   ;;  %p2693_p8 = pmov %p2692_p5 }
  0x69   : > { %vm297_vm0 = vcmask 261120   ;;  %v296_v0 = vld [vmem:[%s259_s10] sm:$0xff]  ;;  %v328_v7 = vld [vmem:[#allocation5] sm:$0xff]  ;;  %v329_v8 = vld [vmem:[#allocation5 + $0x8] sm:$0xff]  ;;  %v2245_v10 = vmov 0.0|0.0   ;;  %vm2246_vm1 = vmmov 0   ;;  %v421_v35 = vlaneseq }
  0x6a   : > { %2219 = vsyncadd (%p2693_p8), [#allocation6], 4294966272  ;;  %v298_v1 = vsel %vm297_vm0, %v296_v0, 0.0  ;;  %v330_v9 = vld [vmem:[#allocation5 + $0x10] sm:$0xff]  ;;  %1970 = vmatprep.subr.bf16.mxu0 %v2245_v10  ;;  %v1971_v11 = vpack.c.bf16 %v329_v8, %v328_v7  ;;  %v331_v12 = vld [vmem:[#allocation5 + $0x18] sm:$0xff]  ;;  %v2247_v13 = vmov 0.0  }
  0x6b   : > { %299 = vadd.xlane.f32.xlu0 %v298_v1  ;;  %1916 = vmatprep.mubr.msk.f32.mxu0 %vm2246_vm1, %v2247_v13  ;;  %v1974_v14 = vpack.c.bf16 %v331_v12, %v330_v9  ;;  %v1853_v19 = vld [vmem:[%s2675_s1] ss:$0 sm:$0xff]  ;;  %s2248_s7 = smov 104   ;;  %s2249_s17 = smov 120   ;;  %v2253_v33 = vmov 1983009808  }
  0x6c   : > { %1919 = vmatprep.subr.mxu1 %v2247_v13  ;;  %1921 = vmatprep.mubr.msk.f32.mxu1 %vm2246_vm1, %v2247_v13  ;;  %v1854_v21 = vld [vmem:[%s2676_s2] ss:$0 sm:$0xff]  ;;  %s2250_s19 = smov 112   ;;  %s2251_s12 = smov 96   ;;  %v419_v34 = vunpack.c.l.s4 %v2253_v33  ;;  %v2254_v36 = vmov 1934713408  }
  0x6d   : > { %1972 = vmatpush3.bf16.msra.mxu0 %v1971_v11  ;;  %s2252_s20 = smov 64   ;;  %v451_v37 = vunpack.c.l.s4 %v2254_v36  ;;  %v422_v40 = vshrl.u32 %v421_v35, 7  ;;  %vm855_vm2 = vcmask 64512   ;;  %s2255_s15 = smov 16   ;;  %vm1649_vm3 = vcmask 130048  }
  0x6e   : > { %1973 = vmatprep.subr.bf16.mxu0 %v2245_v10  ;;  %v420_v39 = vunpack.c.0.s8 %v419_v34  ;;  %s2256_s8 = smov 8   ;;  %s2257_s13 = smov 24   ;;  %vm1651_vm4 = vcmask 195584  }
  0x6f   : > { %v452_v41 = vunpack.c.0.s8 %v451_v37  ;;  %s1879_s29 = sshll.u32 %s2315_s25, 7  ;;  %s295_s14 = scalar_lea.vmem [#allocation8], %s1849_s30 }
  0x70   : > { %v2504_v45 = vsub.s32 %v420_v39, %v422_v40  ;;  %s1752_s16 = sshll.u32 %s295_s14, 4  ;;  %p2694_p0 = scmp.ne.s32.totalorder %s2689_s9, 0  ;;  %s2631_s16 = int_to_ptr.vmem [resolvable:$true] %s1752_s16 }
  0x71   : > { %1975 = vmatpush3.bf16.msra.mxu0 %v1974_v14  ;;  %v2506_v48 = vsub.s32 %v452_v41, %v422_v40  ;;  %s2168_s25 = scalar_lea.vmem %s2631_s16, 128  ;;  %s2258_s30 = smov [#allocation8]  }
  0x72   : > { %1939 = vmatprep.subr.mxu0 %v2247_v13  ;;  %p2169_p11 = scmp.ne.s32.totalorder %s2631_s16, %s2168_s25 }
  0x74   : > { %p2170_p1 = pnand %p2169_p11, %p2694_p0 }
  0x76   : > { %p2171_p3 = pneg %p2170_p1 }
  0xf8   : > { %v300_v2 = vpop.xlane.xlu0 %299 }
  0xf9   : > { %v302_v3 = vmul.f32 0.03125, %v300_v2 }
  0xfb   : > { %v303_v4 = vsub.f32 %v296_v0, %v302_v3 }
  0xfd   : > { %v304_v5 = vmul.f32 %v303_v4, %v303_v4 }
  0xff   : > { %v305_v6 = vsel %vm297_vm0, %v304_v5, 0.0 }
 0x100   : > { %306 = vadd.xlane.f32.xlu0 %v305_v6 }
 0x18d   : > { %v307_v15 = vpop.xlane.xlu0 %306 }
 0x18e   : > { %v308_v16 = vmul.f32 0.03125, %v307_v15 }
 0x190   : > { %v309_v17 = vadd.f32 1e-05, %v308_v16 }
 0x192   : > { %2064 = vrsqrt.f32 %v309_v17 }
 0x19c   : > { %v2065_v18 = vpop.eup %2064 }
 0x19d   : > { %v311_v20 = vmul.f32 %v2065_v18, %v303_v4 }
 0x19f   : > { %v319_v22 = vmul.f32 %v1853_v19, %v311_v20 }
 0x1a1   : > { %v327_v23 = vadd.f32 %v1854_v21, %v319_v22 }
 0x1a3   : > { %1917 = vmatmul.mubr.msk.f32.vlgmr.msra.gmra.mrb[0].mxu0 %vm297_vm0, %v327_v23 }
 0x1a4   : > { %1941 = vmatprep.mubr.msk.f32.mxu0 %vm2246_vm1, %v2247_v13 }
 0x276   : > { %v401_v24 = vpop.f32.mrb[0].mxu0 }
 0x277   : > { %557 = vrot.lane.b32.xlu0 %v401_v24, %s2248_s7  ;;  %553 = vrot.lane.b32.xlu1 %v401_v24, %s2249_s17  ;;  %v1918_v25 = vpop.f32.mrb[1].mxu0  ;;  %v405_v26 = vmul.f32 0.35355338, %v401_v24 }
 0x27b   : > { %555 = vrot.lane.b32.xlu1 %v401_v24, %s2250_s19  ;;  %413 = vrot.lane.b32.xlu0 %v405_v26, %s2248_s7 }
 0x27f   : > { %559 = vrot.lane.b32.xlu1 %v401_v24, %s2251_s12  ;;  %707 = vrot.lane.b32.xlu0 %v401_v24, %s2252_s20 }
 0x283   : > { %407 = vrot.lane.b32.xlu1 %v405_v26, %s2249_s17 }
 0x2e9   : > { %v554_v27 = vpop.permute.xlu1 %553  ;;  %v2500_v29 = vpop.permute.xlu0 %557 }
 0x2ea   : > { %561 = vrot.lane.b32.xlu1 %v554_v27, %s2251_s12 }
 0x2ed   : > { %v2497_v28 = vpop.permute.xlu1 %555  ;;  %v414_v49 = vpop.permute.xlu0 %413 }
 0x2ee   : > { %563 = vrot.lane.b32.xlu1 %v2497_v28, %s2251_s12 }
 0x2f1   : > { %v560_v30 = vpop.permute.xlu1 %559 }
 0x2f2   : > { %565 = vrot.lane.b32.xlu1 %v2500_v29, %s2251_s12  ;;  %s1739_s12 = scalar_lea.sflag [#allocation4], %s2463_s18 }
 0x2f5   : > { %v408_v31 = vpop.permute.xlu1 %407 }
 0x2f6   : > { %410 = vrot.lane.b32.xlu1 %v405_v26, %s2250_s19  ;;  %v432_v54 = vcombine.low %v408_v31, %v414_v49  ;;  %v433_v55 = vcombine.high %v408_v31, %v414_v49  ;;  %s2629_s19 = scalar_lea.hbm %s2680_s6, %s1879_s29 }
 0x2f8   : > { %v440_v3 = vrot.slane %v432_v54, %v2504_v45  ;;  %v447_v4 = vrot.slane %v433_v55, %v2504_v45 }
 0x2fa   : > { %709 = vrot.lane.b32.xlu1 %v554_v27, %s2252_s20 }
 0x35c   : > { %v562_v32 = vpop.permute.xlu1 %561 }
 0x360   : > { %v564_v38 = vpop.permute.xlu1 %563 }
 0x361   : > { %v571_v42 = vcombine.low %v560_v30, %v564_v38  ;;  %v572_v43 = vcombine.high %v560_v30, %v564_v38 }
 0x363   : > { %v579_v50 = vrot.slane %v571_v42, %v2504_v45  ;;  %v586_v51 = vrot.slane %v572_v43, %v2504_v45 }
 0x364   : > { %v566_v44 = vpop.permute.xlu1 %565 }
 0x365   : > { %v587_v46 = vcombine.low %v562_v32, %v566_v44  ;;  %v588_v47 = vcombine.high %v562_v32, %v566_v44 }
 0x367   : > { %v595_v52 = vrot.slane %v587_v46, %v2504_v45  ;;  %v602_v53 = vrot.slane %v588_v47, %v2504_v45 }
 0x368   : > { %v411_v56 = vpop.permute.xlu1 %410 }
 0x369   : > { %v603_v57 = vcombine.low %v579_v50, %v595_v52  ;;  %v604_v58 = vcombine.high %v579_v50, %v595_v52  ;;  %v619_v59 = vcombine.low %v586_v51, %v602_v53  ;;  %v620_v60 = vcombine.high %v586_v51, %v602_v53 }
 0x36a   : > { %v416_v61 = vcombine.low %v405_v26, %v411_v56  ;;  %v417_v62 = vcombine.high %v405_v26, %v411_v56 }
 0x36b   : > { %v611_v63 = vrot.slane %v603_v57, %v2506_v48  ;;  %v618_v0 = vrot.slane %v604_v58, %v2506_v48  ;;  %v627_v1 = vrot.slane %v619_v59, %v2506_v48  ;;  %v634_v2 = vrot.slane %v620_v60, %v2506_v48 }
 0x36c   : > { %v424_v5 = vrot.slane %v416_v61, %v2504_v45  ;;  %v431_v6 = vrot.slane %v417_v62, %v2504_v45 }
 0x36d   : > { %v639_v7 = vcombine.low %v611_v63, %v618_v0  ;;  %v1858_v8 = vcombine.high %v611_v63, %v618_v0  ;;  %v655_v9 = vcombine.low %v627_v1, %v634_v2  ;;  %v1859_v11 = vcombine.high %v627_v1, %v634_v2 }
 0x36e   : > { %v448_v12 = vcombine.low %v424_v5, %v440_v3  ;;  %v449_v14 = vcombine.high %v424_v5, %v440_v3  ;;  %v464_v15 = vcombine.low %v431_v6, %v447_v4  ;;  %v465_v16 = vcombine.high %v431_v6, %v447_v4 }
 0x36f   : > { %v646_v17 = vrot.slane %v639_v7, %v2504_v45  ;;  %v654_v18 = vrot.slane %v1858_v8, %v2504_v45  ;;  %v662_v19 = vrot.slane %v655_v9, %v2504_v45  ;;  %v670_v20 = vrot.slane %v1859_v11, %v2504_v45  ;;  %v710_v9 = vpop.permute.xlu1 %709  ;;  %v708_v11 = vpop.permute.xlu0 %707 }
 0x370   : > { %v456_v21 = vrot.slane %v448_v12, %v2506_v48  ;;  %v463_v22 = vrot.slane %v449_v14, %v2506_v48  ;;  %v472_v23 = vrot.slane %v464_v15, %v2506_v48  ;;  %v479_v24 = vrot.slane %v465_v16, %v2506_v48 }
 0x371   : > { %v671_v25 = vcombine.low %v646_v17, %v654_v18  ;;  %v687_v26 = vcombine.low %v662_v19, %v670_v20  ;;  %v672_v42 = vcombine.high %v646_v17, %v654_v18  ;;  %v688_v43 = vcombine.high %v662_v19, %v670_v20 }
 0x372   : > { %v484_v27 = vcombine.low %v456_v21, %v463_v22  ;;  %v1856_v30 = vcombine.high %v456_v21, %v463_v22  ;;  %v500_v31 = vcombine.low %v472_v23, %v479_v24  ;;  %v1857_v32 = vcombine.high %v472_v23, %v479_v24 }
 0x373   : > { %v679_v33 = vrot.slane %v671_v25, %v2506_v48  ;;  %v695_v34 = vrot.slane %v687_v26, %v2506_v48  ;;  %v686_v52 = vrot.slane %v672_v42, %v2506_v48  ;;  %v702_v53 = vrot.slane %v688_v43, %v2506_v48 }
 0x374   : > { %v491_v35 = vrot.slane %v484_v27, %v2504_v45  ;;  %v499_v36 = vrot.slane %v1856_v30, %v2504_v45  ;;  %v507_v37 = vrot.slane %v500_v31, %v2504_v45  ;;  %v515_v38 = vrot.slane %v1857_v32, %v2504_v45 }
 0x375   : > { %v703_v39 = vcombine.low %v679_v33, %v695_v34  ;;  %v704_v51 = vcombine.high %v679_v33, %v695_v34  ;;  %v705_v57 = vcombine.low %v686_v52, %v702_v53  ;;  %v706_v59 = vcombine.high %v686_v52, %v702_v53 }
 0x376   : > { %v516_v40 = vcombine.low %v491_v35, %v499_v36  ;;  %v532_v41 = vcombine.low %v507_v37, %v515_v38  ;;  %v517_v47 = vcombine.high %v491_v35, %v499_v36  ;;  %v533_v49 = vcombine.high %v507_v37, %v515_v38 }
 0x377   : > { %1920 = vmatpush3.xpose.msk.msra.mxu1 %vm855_vm2, %v703_v39 }
 0x378   : > { %1924 = vmatprep.subr.mxu1 %v2247_v13  ;;  %v524_v44 = vrot.slane %v516_v40, %v2506_v48  ;;  %v540_v46 = vrot.slane %v532_v41, %v2506_v48  ;;  %v531_v55 = vrot.slane %v517_v47, %v2506_v48  ;;  %v547_v56 = vrot.slane %v533_v49, %v2506_v48 }
 0x37a   : > { %v548_v50 = vcombine.low %v524_v44, %v540_v46  ;;  %v549_v54 = vcombine.high %v524_v44, %v540_v46  ;;  %v550_v58 = vcombine.low %v531_v55, %v547_v56  ;;  %v551_v60 = vcombine.high %v531_v55, %v547_v56 }
 0x37c   : > { %1922 = vmatmul.mubr.msk.f32.vlgmr.msra.gmra.mrb[0].mxu1 %vm855_vm2, %v548_v50 }
 0x37d   : > { %1925 = vmatpush3.xpose.msk.msra.mxu1 %vm855_vm2, %v704_v51  ;;  %1926 = vmatprep.mubr.msk.f32.mxu1 %vm2246_vm1, %v2247_v13 }
 0x37e   : > { %1929 = vmatprep.subr.mxu1 %v2247_v13 }
 0x380   : > { %1927 = vmatmul.mubr.msk.f32.vlgmr.msra.gmra.mrb[2].mxu1 %vm855_vm2, %v549_v54 }
 0x381   : > { %1930 = vmatpush3.xpose.msk.msra.mxu1 %vm855_vm2, %v705_v57  ;;  %1931 = vmatprep.mubr.msk.f32.mxu1 %vm2246_vm1, %v2247_v13 }
 0x382   : > { %1934 = vmatprep.subr.mxu1 %v2247_v13 }
 0x384   : > { %1932 = vmatmul.mubr.msk.f32.vlgmr.msra.gmra.mrb[4].mxu1 %vm855_vm2, %v550_v58 }
 0x385   : > { %1935 = vmatpush3.xpose.msk.msra.mxu1 %vm855_vm2, %v706_v59  ;;  %1936 = vmatprep.mubr.msk.f32.mxu1 %vm2246_vm1, %v2247_v13 }
 0x386   : > { %1944 = vmatprep.subr.mxu1 %v2247_v13 }
 0x388   : > { %1937 = vmatmul.mubr.msk.f32.vlgmr.msra.gmra.mrb[6].mxu1 %vm855_vm2, %v551_v60 }
 0x389   : > { %1946 = vmatprep.mubr.msk.f32.mxu1 %vm2246_vm1, %v2247_v13 }
 0x44f   : > { %v928_v61 = vpop.f32.mrb[0].mxu1 }
 0x450   : > { %v1923_v62 = vpop.f32.mrb[1].mxu1  ;;  %v1160_v63 = vsel %vm855_vm2, %v928_v61, -inf }
 0x451   : > { %1161 = vmax.xlane.f32.xlu1 %v1160_v63 }
 0x453   : > { %v1004_v0 = vpop.f32.mrb[2].mxu1 }
 0x454   : > { %v1928_v1 = vpop.f32.mrb[3].mxu1  ;;  %v1163_v2 = vsel %vm855_vm2, %v1004_v0, -inf }
 0x455   : > { %1164 = vmax.xlane.f32.xlu0 %v1163_v2 }
 0x457   : > { %v1080_v3 = vpop.f32.mrb[4].mxu1 }
 0x458   : > { %v1933_v4 = vpop.f32.mrb[5].mxu1  ;;  %v1166_v5 = vsel %vm855_vm2, %v1080_v3, -inf }
 0x459   : > { %1167 = vmax.xlane.f32.xlu0 %v1166_v5 }
 0x45b   : > { %v1156_v6 = vpop.f32.mrb[6].mxu1 }
 0x45c   : > { %v1938_v7 = vpop.f32.mrb[7].mxu1  ;;  %v1169_v8 = vsel %vm855_vm2, %v1156_v6, -inf }
 0x45d   : > { %1170 = vmax.xlane.f32.xlu1 %v1169_v8 }
 0x46e   : > { %711 = vrot.lane.b32.xlu1 %v2497_v28, %s2252_s20 }
 0x46f   : > { %713 = vrot.lane.b32.xlu0 %v2500_v29, %s2252_s20  ;;  %s2172_s20 = sshll.u32 %s2258_s30, 4  ;;  %s2173_s20 = int_to_ptr.vmem [resolvable:$false] %s2172_s20 }
 0x470   : > { %p2175_p7 = scmp.lt.s32.totalorder %s2631_s16, %s2173_s20 }
 0x4de   : > { %v1162_v12 = vpop.xlane.xlu1 %1161 }
 0x4df   : > { %v1172_v14 = vsub.f32 %v928_v61, %v1162_v12 }
 0x4e1   : > { %v1176_v15 = vmul.f32 1.442695, %v1172_v14 }
 0x4e2   : > { %v1165_v16 = vpop.xlane.xlu0 %1164 }
 0x4e3   : > { %2066 = vpow2.f32 %v1176_v15  ;;  %v1173_v17 = vsub.f32 %v1004_v0, %v1165_v16 }
 0x4e5   : > { %v1178_v18 = vmul.f32 1.442695, %v1173_v17 }
 0x4e6   : > { %v1168_v19 = vpop.xlane.xlu0 %1167 }
 0x4e7   : > { %2068 = vpow2.f32 %v1178_v18  ;;  %v1174_v20 = vsub.f32 %v1080_v3, %v1168_v19 }
 0x4e9   : > { %v1180_v21 = vmul.f32 1.442695, %v1174_v20 }
 0x4ea   : > { %v714_v22 = vpop.permute.xlu0 %713  ;;  %v1171_v23 = vpop.xlane.xlu1 %1170 }
 0x4eb   : > { %2070 = vpow2.f32 %v1180_v21  ;;  %v1175_v28 = vsub.f32 %v1156_v6, %v1171_v23  ;;  %v735_v25 = vcombine.low %v710_v9, %v714_v22  ;;  %v736_v29 = vcombine.high %v710_v9, %v714_v22  ;;  %v1653_v9 = vld [vmem:[#allocation7] sm:$0xff] }
 0x4ed   : > { %v2067_v24 = vpop.eup %2066  ;;  %v1182_v26 = vmul.f32 1.442695, %v1175_v28  ;;  %v743_v34 = vrot.slane %v735_v25, %v2504_v45  ;;  %v750_v35 = vrot.slane %v736_v29, %v2504_v45 }
 0x4ee   : > { %v712_v27 = vpop.permute.xlu1 %711  ;;  %v1184_v30 = vsel %vm855_vm2, %v2067_v24, 0.0 }
 0x4ef   : > { %2072 = vpow2.f32 %v1182_v26  ;;  %v719_v31 = vcombine.low %v708_v11, %v712_v27  ;;  %v720_v32 = vcombine.high %v708_v11, %v712_v27  ;;  %1185 = vadd.xlane.f32.xlu1 %v1184_v30  ;;  %v1654_v11 = vld [vmem:[#allocation7 + $0x8] sm:$0xff] }
 0x4f0   : > { %v1977_v12 = vpack.c.bf16 %v1654_v11, %v1653_v9 }
 0x4f1   : > { %v2069_v33 = vpop.eup %2068  ;;  %v727_v36 = vrot.slane %v719_v31, %v2504_v45  ;;  %v734_v37 = vrot.slane %v720_v32, %v2504_v45 }
 0x4f2   : > { %v1187_v38 = vsel %vm855_vm2, %v2069_v33, 0.0 }
 0x4f3   : > { %v751_v39 = vcombine.low %v727_v36, %v743_v34  ;;  %v752_v40 = vcombine.high %v727_v36, %v743_v34  ;;  %v767_v41 = vcombine.low %v734_v37, %v750_v35  ;;  %v768_v42 = vcombine.high %v734_v37, %v750_v35  ;;  %1188 = vadd.xlane.f32.xlu0 %v1187_v38 }
 0x4f5   : > { %v2071_v43 = vpop.eup %2070  ;;  %v759_v44 = vrot.slane %v751_v39, %v2506_v48  ;;  %v766_v46 = vrot.slane %v752_v40, %v2506_v48  ;;  %v775_v47 = vrot.slane %v767_v41, %v2506_v48  ;;  %v782_v49 = vrot.slane %v768_v42, %v2506_v48 }
 0x4f6   : > { %v1190_v50 = vsel %vm855_vm2, %v2071_v43, 0.0 }
 0x4f7   : > { %v787_v51 = vcombine.low %v759_v44, %v766_v46  ;;  %v1860_v52 = vcombine.high %v759_v44, %v766_v46  ;;  %v803_v53 = vcombine.low %v775_v47, %v782_v49  ;;  %v1861_v54 = vcombine.high %v775_v47, %v782_v49  ;;  %1191 = vadd.xlane.f32.xlu0 %v1190_v50  ;;  %v1655_v44 = vld [vmem:[#allocation7 + $0x10] sm:$0xff]  ;;  %v1656_v46 = vld [vmem:[#allocation7 + $0x18] sm:$0xff] }
 0x4f9   : > { %v2073_v55 = vpop.eup %2072  ;;  %v794_v56 = vrot.slane %v787_v51, %v2504_v45  ;;  %v802_v57 = vrot.slane %v1860_v52, %v2504_v45  ;;  %v810_v58 = vrot.slane %v803_v53, %v2504_v45  ;;  %v818_v59 = vrot.slane %v1861_v54, %v2504_v45 }
 0x4fa   : > { %v1193_v60 = vsel %vm855_vm2, %v2073_v55, 0.0  ;;  %v1980_v52 = vpack.c.bf16 %v1656_v46, %v1655_v44 }
 0x4fb   : > { %1194 = vadd.xlane.f32.xlu1 %v1193_v60  ;;  %v819_v61 = vcombine.low %v794_v56, %v802_v57  ;;  %v835_v62 = vcombine.low %v810_v58, %v818_v59  ;;  %v820_v63 = vcombine.high %v794_v56, %v802_v57  ;;  %v836_v0 = vcombine.high %v810_v58, %v818_v59 }
 0x4fd   : > { %v827_v1 = vrot.slane %v819_v61, %v2506_v48  ;;  %v843_v2 = vrot.slane %v835_v62, %v2506_v48  ;;  %v834_v3 = vrot.slane %v820_v63, %v2506_v48  ;;  %v850_v4 = vrot.slane %v836_v0, %v2506_v48 }
 0x4ff   : > { %v851_v5 = vcombine.low %v827_v1, %v843_v2  ;;  %v852_v6 = vcombine.high %v827_v1, %v843_v2  ;;  %v853_v7 = vcombine.low %v834_v3, %v850_v4  ;;  %v854_v8 = vcombine.high %v834_v3, %v850_v4 }
 0x501   : > { %1940 = vmatpush3.msra.mxu0 %v851_v5  ;;  %1945 = vmatpush3.msra.mxu1 %v852_v6 }
 0x502   : > { %1942 = vmatmul.mubr.msk.f32.vlgmr.msra.gmra.mrb[2].mxu0 %vm855_vm2, %v2067_v24  ;;  %1947 = vmatmul.mubr.msk.f32.vlgmr.msra.gmra.mrb[8].mxu1 %vm855_vm2, %v2069_v33 }
 0x503   : > { %1949 = vmatprep.subr.mxu0 %v2247_v13  ;;  %1954 = vmatprep.subr.mxu1 %v2247_v13 }
 0x504   : > { %1950 = vmatpush3.msra.mxu0 %v853_v7  ;;  %1955 = vmatpush3.msra.mxu1 %v854_v8 }
 0x505   : > { %1951 = vmatprep.mubr.msk.f32.mxu0 %vm2246_vm1, %v2247_v13  ;;  %1956 = vmatprep.mubr.msk.f32.mxu1 %vm2246_vm1, %v2247_v13 }
 0x506   : > { %1952 = vmatmul.mubr.msk.f32.vlgmr.msra.gmra.mrb[4].mxu0 %vm855_vm2, %v2071_v43  ;;  %1957 = vmatmul.mubr.msk.f32.vlgmr.msra.gmra.mrb[10].mxu1 %vm855_vm2, %v2073_v55 }
 0x507   : > { %1976 = vmatprep.subr.bf16.mxu0 %v2245_v10  ;;  %1967 = vmatprep.mubr.msk.f32.mxu0 %vm2246_vm1, %v2247_v13 }
 0x508   : > { %1978 = vmatpush3.bf16.msra.mxu0 %v1977_v12 }
 0x509   : > { %1979 = vmatprep.subr.bf16.mxu0 %v2245_v10 }
 0x50c   : > { %1981 = vmatpush3.bf16.msra.mxu0 %v1980_v52 }
 0x57c   : > { %v1186_v15 = vpop.xlane.xlu1 %1185 }
 0x57d   : > { %2074 = vrcp.f32 %v1186_v15  ;;  %v1876_v15 = vld [vmem:[%s2679_s5] ss:$0 sm:$0xff] }
 0x580   : > { %v1189_v14 = vpop.xlane.xlu0 %1188 }
 0x581   : > { %2076 = vrcp.f32 %v1189_v14 }
 0x584   : > { %v1192_v16 = vpop.xlane.xlu0 %1191 }
 0x585   : > { %2078 = vrcp.f32 %v1192_v16 }
 0x587   : > { %v2075_v20 = vpop.eup %2074 }
 0x588   : > { %v1195_v17 = vpop.xlane.xlu1 %1194 }
 0x589   : > { %2080 = vrcp.f32 %v1195_v17 }
 0x58b   : > { %v2077_v13 = vpop.eup %2076 }
 0x58f   : > { %v2079_v23 = vpop.eup %2078 }
 0x593   : > { %v2081_v28 = vpop.eup %2080 }
 0x5d5   : > { %v1265_v18 = vpop.f32.mrb[2].mxu0  ;;  %v1338_v19 = vpop.f32.mrb[8].mxu1 }
 0x5d6   : > { %v1943_v21 = vpop.f32.mrb[3].mxu0  ;;  %v1948_v22 = vpop.f32.mrb[9].mxu1  ;;  %v1496_v29 = vmul.f32 %v2075_v20, %v1265_v18  ;;  %v1497_v10 = vmul.f32 %v2077_v13, %v1338_v19 }
 0x5d9   : > { %v1411_v24 = vpop.f32.mrb[4].mxu0  ;;  %v1484_v25 = vpop.f32.mrb[10].mxu1 }
 0x5da   : > { %v1498_v26 = vmul.f32 %v2079_v23, %v1411_v24  ;;  %v1499_v27 = vmul.f32 %v2081_v28, %v1484_v25  ;;  %v1953_v30 = vpop.f32.mrb[5].mxu0  ;;  %v1958_v31 = vpop.f32.mrb[11].mxu1 }
 0x5dc   : > { %v1500_v32 = vcombine.low %v1496_v29, %v1498_v26  ;;  %v1501_v33 = vcombine.high %v1496_v29, %v1498_v26  ;;  %v1516_v34 = vcombine.low %v1497_v10, %v1499_v27  ;;  %v1517_v35 = vcombine.high %v1497_v10, %v1499_v27 }
 0x5de   : > { %v1508_v36 = vrot.slane %v1500_v32, %v2504_v45  ;;  %v1515_v37 = vrot.slane %v1501_v33, %v2504_v45  ;;  %v1524_v38 = vrot.slane %v1516_v34, %v2504_v45  ;;  %v1531_v39 = vrot.slane %v1517_v35, %v2504_v45 }
 0x5e0   : > { %v1532_v40 = vcombine.low %v1508_v36, %v1524_v38  ;;  %v1533_v41 = vcombine.high %v1508_v36, %v1524_v38  ;;  %v1548_v42 = vcombine.low %v1515_v37, %v1531_v39  ;;  %v1549_v43 = vcombine.high %v1515_v37, %v1531_v39 }
 0x5e2   : > { %v1540_v47 = vrot.slane %v1532_v40, %v2506_v48  ;;  %v1547_v49 = vrot.slane %v1533_v41, %v2506_v48  ;;  %v1556_v50 = vrot.slane %v1548_v42, %v2506_v48  ;;  %v1563_v51 = vrot.slane %v1549_v43, %v2506_v48 }
 0x5e4   : > { %v1568_v53 = vcombine.low %v1540_v47, %v1547_v49  ;;  %v1874_v54 = vcombine.high %v1540_v47, %v1547_v49  ;;  %v1584_v55 = vcombine.low %v1556_v50, %v1563_v51  ;;  %v1875_v56 = vcombine.high %v1556_v50, %v1563_v51 }
 0x5e6   : > { %v1575_v57 = vrot.slane %v1568_v53, %v2504_v45  ;;  %v1583_v58 = vrot.slane %v1874_v54, %v2504_v45  ;;  %v1591_v59 = vrot.slane %v1584_v55, %v2504_v45  ;;  %v1599_v60 = vrot.slane %v1875_v56, %v2504_v45 }
 0x5e8   : > { %v1601_v61 = vcombine.high %v1575_v57, %v1583_v58  ;;  %v1617_v62 = vcombine.high %v1591_v59, %v1599_v60  ;;  %v1600_v63 = vcombine.low %v1575_v57, %v1583_v58  ;;  %v1616_v0 = vcombine.low %v1591_v59, %v1599_v60 }
 0x5ea   : > { %v1615_v1 = vrot.slane %v1601_v61, %v2506_v48  ;;  %v1631_v2 = vrot.slane %v1617_v62, %v2506_v48  ;;  %v1608_v3 = vrot.slane %v1600_v63, %v2506_v48  ;;  %v1624_v4 = vrot.slane %v1616_v0, %v2506_v48 }
 0x5ec   : > { %v1634_v5 = vcombine.low %v1615_v1, %v1631_v2  ;;  %v1633_v6 = vcombine.high %v1608_v3, %v1624_v4  ;;  %v1635_v7 = vcombine.high %v1615_v1, %v1631_v2  ;;  %v1632_v8 = vcombine.low %v1608_v3, %v1624_v4 }
 0x5ee   : > { %1641 = vrot.lane.b32.xlu1 %v1634_v5, %s2255_s15  ;;  %1637 = vrot.lane.b32.xlu0 %v1633_v6, %s2256_s8  ;;  %s2174_s15 = scalar_lea.vmem %s2173_s20, 256 }
 0x5ef   : > { %p2176_p9 = scmp.lt.s32.totalorder %s2174_s15, %s2168_s25 }
 0x5f1   : > { %p2177_p12 = por %p2176_p9, %p2175_p7 }
 0x5f2   : > { %1645 = vrot.lane.b32.xlu1 %v1635_v7, %s2257_s13 }
 0x5f3   : > { %p2178_p2 = pnand %p2177_p12, %p2171_p3 }
 0x660   : > { %v1642_v45 = vpop.permute.xlu1 %1641  ;;  %v1638_v9 = vpop.permute.xlu0 %1637 }
 0x661   : > { %v1648_v11 = vsel %vm855_vm2, %v1632_v8, %v1638_v9 }
 0x662   : > { %v1650_v12 = vsel %vm1649_vm3, %v1648_v11, %v1642_v45 }
 0x664   : > { %v1646_v48 = vpop.permute.xlu1 %1645 }
 0x665   : > { %v1652_v14 = vsel %vm1651_vm4, %v1650_v12, %v1646_v48 }
 0x666   : > { %1968 = vmatmul.mubr.msk.f32.vlgmr.msra.gmra.mrb[6].mxu0 %vm297_vm0, %v1652_v14 }
 0x739   : > { %v1733_v16 = vpop.f32.mrb[6].mxu0 }
 0x73a   : > { %v1734_v17 = vadd.f32 %v1876_v15, %v1733_v16  ;;  %v1969_v18 = vpop.f32.mrb[7].mxu0 }
 0x73c   : > { %1737 = vst.msk [vmem:[%s295_s14] sm:$0xff] %vm297_vm0, %v1734_v17 }
 0x73d   : > { %2181 = shalt.err (!%p2178_p2)
}
 0x73e   : > { %s2182_s18 = scalar_lea.hbm %s2629_s19, 128  ;;  %s2186_s10 = scalar_lea.hbm %s2680_s6, 256 }
 0x73f   : > { %p2183_p13 = scmp.ne.s32.totalorder %s2629_s19, %s2182_s18  ;;  %p2187_p4 = scmp.lt.u32.totalorder %s2629_s19, %s2680_s6 }
 0x740   : > { %p2188_p5 = scmp.lt.u32.totalorder %s2186_s10, %s2182_s18  ;;  %p2190_p11 = scmp.lt.u32.totalorder %s2182_s18, %s2629_s19 }
 0x741   : > { %p2184_p6 = pnand %p2183_p13, %p2694_p0 }
 0x742   : > { %p2189_p8 = por %p2188_p5, %p2187_p4 }
 0x743   : > { %p2185_p10 = pneg %p2184_p6 }
 0x744   : > { %p2191_p1 = por %p2190_p11, %p2189_p8 }
 0x746   : > { %p2192_p3 = pnand %p2191_p1, %p2185_p10 }
 0x748   : > { %2195 = shalt.err (!%p2192_p3)
}
 0x749   : > { %1992 = dma.vmem_to_hbm [thread:$0]  (%p2694_p0), %s2631_s16, 128, %s2629_s19, %s1739_s12  }
 0x74a PF: > { %s1764_s14 = sand.u32 1, %s2226_s21   ;;  %p2695_p7 = scmp.ne.s32.totalorder %s2685_s28, 0 }
 0x74b   : > { %p2696_p9 = scmp.ge.s32.totalorder %s2238_s24, 2  ;;  %s1765_s7 = scalar_lea.sflag [#allocation4], %s1764_s14 }
 0x74d   : > { %p2006_p12 = pnand %p2696_p9, %p2695_p7 }
 0x74f   : > { %2221 = dma.done.wait (!%p2006_p12), %s1765_s7, 128  }
 0x750   : > { %2223 = vsyncadd (!%p2006_p12), %s1765_s7, 4294967168  ;;  %p20_p2 = scmp.ge.s32.totalorder %s2404_s26, 4   ;;  %s2697_s21 = smov %s2230_s22 }
 0x751   : > { %s2698_s22 = smov %s2234_s23  ;;  %s2699_s23 = smov %s2420_s11 }
 0x752   : > { %s2700_s24 = smov %s2404_s26  ;;  %22 = sbr.rel (!%p20_p2) target bundleno = 6 (0x6), region = 97 }
 0x759   :  { %1770 = vsyncpa [#allocation3], 1 }
 0x75a   :  { %1772 = vsyncpa [#allocation3 + $0x1], 1 }
 0x75b   :  { %1773 = vsyncpa [#allocation6], 1 }
 0x75c   :  { %1774 = vsyncpa [#allocation4], 1 }
 0x75d   :  { %1776 = vsyncpa [#allocation4 + $0x1], 1 }

</bundles_post_ra>
